<compile_context>
chip_gen: v7x
topology: tpu7x:2x2x1
jax: 0.10.0
libtpu: 0.0.40
codegen_flags: <defaults>
</compile_context>

<pallas_src>
import jax
import jax.numpy as jnp
from jax import lax
from jax.experimental import pallas as pl
from jax.experimental.pallas import tpu as pltpu


_MIB = 1024 * 1024


def _vmem_budget_bytes():
    """Per-generation scoped-VMEM cap.

    v5e/v6e have 128 MiB physical VMEM -> allow ~100 MiB scoped.
    v7x has 64 MiB per TensorCore -> cap at ~52 MiB so Mosaic internal
    scratch / semaphores / double buffers still have headroom.
    """
    try:
        phys = pltpu.get_tpu_info().vmem_capacity_bytes
    except Exception:
        phys = 64 * _MIB
    if phys >= 128 * _MIB:
        return 100 * _MIB
    return 52 * _MIB


def _largest_tile(full, candidates):
    """Largest candidate <= full, else the full extent (full-extent block)."""
    for c in candidates:
        if c <= full:
            return c
    return full


def _fit_vocab_tiles(M, V, D, e_bytes, o_bytes, budget):
    """Pick (tm, tv) for the vocab projection that fit the VMEM budget."""
    tm = _largest_tile(M, (1024, 512, 256, 128, 64, 32, 16, 8))
    tv = _largest_tile(V, (2048, 1024, 512, 256, 128))

    def vmem(tm_, tv_):
        # double-buffered h tile, emb tile and output tile
        return 2 * (tm_ * D * e_bytes + tv_ * D * e_bytes + tm_ * tv_ * o_bytes)

    # Shrink tv first (tm sets the arithmetic intensity of the emb stream),
    # then tm; keep tiles (8,128)-aligned.
    while vmem(tm, tv) > budget:
        if tv > 512 and tv % 256 == 0:
            tv //= 2
        elif tm > 128 and tm % 16 == 0:
            tm //= 2
        elif tv > 128 and tv % 256 == 0:
            tv //= 2
        elif tm > 8 and tm % 16 == 0:
            tm //= 2
        else:
            break
    return tm, tv


def _fit_ff_tiles(M, D, x_bytes, w_bytes, h_bytes, budget):
    """Pick (tm, tn) for the Linear+ReLU stage that fit the VMEM budget."""
    tm = _largest_tile(M, (512, 256, 128, 64, 32, 16, 8))
    tn = _largest_tile(D, (1024, 512, 256, 128))

    def vmem(tm_, tn_):
        return 2 * (tm_ * D * x_bytes + tn_ * D * w_bytes
                    + tn_ * x_bytes + tm_ * tn_ * h_bytes)

    while vmem(tm, tn) > budget:
        if tn > 128 and tn % 256 == 0:
            tn //= 2
        elif tm > 8 and tm % 16 == 0:
            tm //= 2
        else:
            break
    return tm, tn


def ff_relu_kernel(x_ref, w1_ref, b1_ref, h_ref):
    # x: (tm, D); w1 tile: (tn, D) rows of the nn.Linear (out, in) weight.
    # Contract last dims of both operands == x @ w1_tile.T -> (tm, tn).
    h = lax.dot_general(
        x_ref[...], w1_ref[...],
        dimension_numbers=(((1,), (1,)), ((), ())),
        preferred_element_type=jnp.float32)
    h = h + b1_ref[...]                              # (tm, tn) + (1, tn)
    # Single cast to the vocab-matmul input dtype (emb.dtype) happens here.
    h_ref[...] = jnp.maximum(h, 0.0).astype(h_ref.dtype)


def vocab_proj_kernel(h_ref, emb_ref, o_ref):
    # h tile: (tm, D) already in emb.dtype; emb tile: (tv, D) row-major.
    # Transposed-RHS matmul (contract last dims) -> Mosaic latches RHS into
    # the MXU without a per-step XLU transpose.
    logits = lax.dot_general(
        h_ref[...], emb_ref[...],
        dimension_numbers=(((1,), (1,)), ((), ())),
        preferred_element_type=jnp.float32)
    o_ref[...] = logits.astype(o_ref.dtype)


def generator_forward(x, w1, b1, emb, *, tm=None, tv=None, tm_ff=None, tn_ff=None):
    """x: (B, S, D); w1: (D, D) [out, in] like nn.Linear; b1: (D,);
    emb: (V, D) embedding table.  Returns logits (B, S, V)."""
    B, S, D = x.shape
    V, D_e = emb.shape
    assert D_e == D
    M = B * S

    xm = x.reshape(M, D)
    b1_2d = b1.reshape(1, D)

    vmem_limit = _vmem_budget_bytes()
    fit_budget = int(0.85 * vmem_limit)

    x_bytes = x.dtype.itemsize
    w_bytes = w1.dtype.itemsize
    e_bytes = emb.dtype.itemsize
    o_bytes = x.dtype.itemsize

    # ------------- Stage 1: H = ReLU(x @ W1^T + b1), stored in emb.dtype ----
    a_tm, a_tn = _fit_ff_tiles(M, D, x_bytes, w_bytes, e_bytes, fit_budget)
    if tm_ff is not None:
        a_tm = tm_ff
    if tn_ff is not None:
        a_tn = tn_ff
    ff_grid = (pl.cdiv(M, a_tm), pl.cdiv(D, a_tn))

    ff_cost = pl.CostEstimate(
        flops=2 * M * D * D,
        transcendentals=0,
        bytes_accessed=(M * D * x_bytes
                        + pl.cdiv(M, a_tm) * (D * D * w_bytes + D * b1.dtype.itemsize)
                        + M * D * e_bytes))

    h = pl.pallas_call(
        ff_relu_kernel,
        out_shape=jax.ShapeDtypeStruct((M, D), emb.dtype),
        grid_spec=pltpu.PrefetchScalarGridSpec(
            num_scalar_prefetch=0,
            grid=ff_grid,
            in_specs=[
                pl.BlockSpec((a_tm, D), lambda i, j: (i, 0)),   # x rows
                pl.BlockSpec((a_tn, D), lambda i, j: (j, 0)),   # W1 row tile
                pl.BlockSpec((1, a_tn), lambda i, j: (0, j)),   # bias tile
            ],
            out_specs=pl.BlockSpec((a_tm, a_tn), lambda i, j: (i, j)),
        ),
        compiler_params=pltpu.CompilerParams(
            dimension_semantics=("parallel", "parallel"),
            vmem_limit_bytes=vmem_limit),
        cost_estimate=ff_cost,
    )(xm, w1, b1_2d)

    # ------------- Stage 2: logits = H @ E^T ---------------------------------
    v_tm, v_tv = _fit_vocab_tiles(M, V, D, e_bytes, o_bytes, fit_budget)
    if tm is not None:
        v_tm = tm
    if tv is not None:
        v_tv = tv
    grid = (pl.cdiv(M, v_tm), pl.cdiv(V, v_tv))

    cost = pl.CostEstimate(
        flops=2 * M * D * V,
        transcendentals=0,
        bytes_accessed=(M * D * e_bytes                      # H, once per M-tile
                        + pl.cdiv(M, v_tm) * V * D * e_bytes  # emb, re-streamed
                        + M * V * o_bytes))                   # output, real dtype

    out = pl.pallas_call(
        vocab_proj_kernel,
        out_shape=jax.ShapeDtypeStruct((M, V), x.dtype),
        grid_spec=pltpu.PrefetchScalarGridSpec(
            num_scalar_prefetch=0,
            grid=grid,
            in_specs=[
                pl.BlockSpec((v_tm, D), lambda i, j: (i, 0)),   # H rows (per i)
                pl.BlockSpec((v_tv, D), lambda i, j: (j, 0)),   # emb tile, row-major
            ],
            out_specs=pl.BlockSpec((v_tm, v_tv), lambda i, j: (i, j)),
        ),
        compiler_params=pltpu.CompilerParams(
            dimension_semantics=("parallel", "parallel"),
            vmem_limit_bytes=vmem_limit),
        cost_estimate=cost,
    )(h, emb)

    return out.reshape(B, S, V)


if __name__ == "__main__":
    def ref_forward(x, w1, b1, emb):
        return jnp.maximum(x @ w1.T + b1, 0.0) @ emb.T

    # ---- Test 1: small shapes (single grid cell) ----------------------------
    B, S, D, V = 2, 8, 32, 64
    k_x, k_w1, k_b1, k_emb = jax.random.split(jax.random.PRNGKey(0), 4)
    x = jax.random.normal(k_x, (B, S, D), dtype=jnp.float32)
    # nn.Linear(d_model, d_model): weight (out, in), bias (out,)
    w1 = jax.random.normal(k_w1, (D, D), dtype=jnp.float32) * (1.0 / D ** 0.5)
    b1 = jax.random.normal(k_b1, (D,), dtype=jnp.float32) * 0.01
    # word embedding table (vocab, d_model); reverse_mul -> h @ emb.T
    emb = jax.random.normal(k_emb, (V, D), dtype=jnp.float32) * (1.0 / D ** 0.5)

    out = jax.block_until_ready(generator_forward(x, w1, b1, emb))
    ref = ref_forward(x, w1, b1, emb)
    assert out.shape == (B, S, V)
    assert jnp.allclose(out, ref.reshape(B, S, V), atol=1e-4, rtol=1e-4)

    # ---- Test 2: multi-tile grid with non-multiple M and V (padded edges) ---
    B2, S2, D2, V2 = 5, 8, 64, 320          # M=40 (3 padded M-tiles), V=320 (3 V-tiles)
    k_x, k_w1, k_b1, k_emb = jax.random.split(jax.random.PRNGKey(1), 4)
    x2 = jax.random.normal(k_x, (B2, S2, D2), dtype=jnp.float32)
    w12 = jax.random.normal(k_w1, (D2, D2), dtype=jnp.float32) * (1.0 / D2 ** 0.5)
    b12 = jax.random.normal(k_b1, (D2,), dtype=jnp.float32) * 0.01
    emb2 = jax.random.normal(k_emb, (V2, D2), dtype=jnp.float32) * (1.0 / D2 ** 0.5)

    out2 = jax.block_until_ready(
        generator_forward(x2, w12, b12, emb2, tm=16, tv=128, tm_ff=16, tn_ff=64))
    ref2 = ref_forward(x2, w12, b12, emb2)
    assert out2.shape == (B2, S2, V2)
    assert jnp.allclose(out2, ref2.reshape(B2, S2, V2), atol=1e-3, rtol=1e-3)

    print("KERNEL_OK")
</pallas_src>

<mosaic_0001>
module attributes {stable_mosaic.version = 11 : i64} {
  func.func @ff_relu_kernel(%arg0: i32, %arg1: i32, %arg2: memref<16x32xf32, #tpu.memory_space<vmem>>, %arg3: memref<32x32xf32, #tpu.memory_space<vmem>>, %arg4: memref<1x32xf32, #tpu.memory_space<vmem>>, %arg5: memref<16x32xf32, #tpu.memory_space<vmem>>) attributes {dimension_semantics = [#tpu.dimension_semantics<parallel>, #tpu.dimension_semantics<parallel>], iteration_bounds = array<i64: 1, 1>, scalar_prefetch = 0 : i64, scratch_operands = 0 : i64, tpu.core_type = #tpu.core_type<tc>, window_params = [{transform_indices = @transform_0, window_bounds = array<i64: 16, 32>}, {transform_indices = @transform_1, window_bounds = array<i64: 32, 32>}, {transform_indices = @transform_2, window_bounds = array<i64: 1, 32>}, {transform_indices = @transform_3, window_bounds = array<i64: 16, 32>}]} {
    %c0 = arith.constant 0 : index
    %c0_0 = arith.constant 0 : index
    %0 = vector.load %arg2[%c0, %c0_0] : memref<16x32xf32, #tpu.memory_space<vmem>>, vector<16x32xf32>
    %c0_1 = arith.constant 0 : index
    %c0_2 = arith.constant 0 : index
    %1 = vector.load %arg3[%c0_1, %c0_2] : memref<32x32xf32, #tpu.memory_space<vmem>>, vector<32x32xf32>
    %cst = arith.constant dense<0.000000e+00> : vector<16x32xf32>
    %2 = tpu.matmul %0, %1, %cst {dimension_numbers = #tpu.dot_dimension_numbers<[1], [1], [0], [0], [0, 0, 1, 0], [], []>} : vector<16x32xf32>, vector<32x32xf32>, vector<16x32xf32> -> vector<16x32xf32>
    %c0_3 = arith.constant 0 : index
    %c0_4 = arith.constant 0 : index
    %3 = vector.load %arg4[%c0_3, %c0_4] : memref<1x32xf32, #tpu.memory_space<vmem>>, vector<1x32xf32>
    %4 = vector.broadcast %3 : vector<1x32xf32> to vector<16x32xf32>
    %5 = arith.addf %2, %4 : vector<16x32xf32>
    %cst_5 = arith.constant 0.000000e+00 : f32
    %6 = vector.broadcast %cst_5 : f32 to vector<16x32xf32>
    %7 = arith.maximumf %5, %6 : vector<16x32xf32>
    %c0_6 = arith.constant 0 : index
    %c0_7 = arith.constant 0 : index
    %8 = vector.load %arg5[%c0_6, %c0_7] : memref<16x32xf32, #tpu.memory_space<vmem>>, vector<16x32xf32>
    tpu.vector_store %arg5[%c0_6, %c0_7], %7 {strides = array<i32>} : memref<16x32xf32, #tpu.memory_space<vmem>>, vector<16x32xf32>,
    return
  }
  func.func @transform_0(%arg0: i32, %arg1: i32) -> (i32, i32) {
    %c0_i32 = arith.constant 0 : i32
    %c0_i32_0 = arith.constant 0 : i32
    return %arg0, %c0_i32 : i32, i32
  }
  func.func @transform_1(%arg0: i32, %arg1: i32) -> (i32, i32) {
    %c0_i32 = arith.constant 0 : i32
    %c0_i32_0 = arith.constant 0 : i32
    return %arg1, %c0_i32 : i32, i32
  }
  func.func @transform_2(%arg0: i32, %arg1: i32) -> (i32, i32) {
    %c0_i32 = arith.constant 0 : i32
    %c0_i32_0 = arith.constant 0 : i32
    return %c0_i32, %arg1 : i32, i32
  }
  func.func @transform_3(%arg0: i32, %arg1: i32) -> (i32, i32) {
    %c0_i32 = arith.constant 0 : i32
    return %arg0, %arg1 : i32, i32
  }
}

</mosaic_0001>

<bundles_post_ra>
// kernel: tpu_custom_call.1
= control target key start
LH: loop header
LB: loop body
LE: loop exit
PB: predicated region body
PF: predicated region fallthrough
CT: control target
= control target key end

     0   :  { %8 = vsyncpa [#allocation3], 0  ;;  %s364_s0 = inlined_call_operand.hbm [shape: f32[16,32], index: 0, kind: input, shape index: {}]   ;;  %s365_s1 = inlined_call_operand.hbm [shape: f32[32,32], index: 1, kind: input, shape index: {}]   ;;  %s366_s2 = inlined_call_operand.vmem [shape: f32[1,32], index: 2, kind: input, shape index: {}]   ;;  %s367_s3 = inlined_call_operand.hbm [shape: f32[16,32], index: 3, kind: output, shape index: {}]  }
   0x1   :  { %9 = vsyncpa [#allocation6], 0 }
   0x2   :  { %10 = vsyncpa [#allocation4], 0  ;;  %s285_s12 = smov [#allocation2]   ;;  %s213_s16 = scalar_lea.hbm %s364_s0, 256 }
   0x3   :  { %s16_s13 = sshll.u32 %s285_s12, 4  ;;  %p214_p0 = scmp.ne.s32.totalorder %s364_s0, %s213_s16  ;;  %s17_s13 = int_to_ptr.vmem [resolvable:$true] %s16_s13 }
   0x4   :  { %p217_p1 = scmp.lt.u32.totalorder %s213_s16, %s364_s0 }
   0x6   :  { %p219_p2 = pnand %p217_p1, %p214_p0 }
   0x8   :  { %222 = shalt.err (!%p219_p2)
}
   0x9   :  { %s223_s21 = scalar_lea.vmem %s17_s13, 256  ;;  %p228_p4 = scmp.lt.s32.totalorder %s17_s13, %s17_s13 }
   0xa   :  { %p224_p3 = scmp.ne.s32.totalorder %s17_s13, %s223_s21  ;;  %p229_p5 = scmp.lt.s32.totalorder %s223_s21, %s223_s21 }
   0xc   :  { %p230_p6 = por %p229_p5, %p228_p4 }
   0xe   :  { %p231_p7 = pnand %p230_p6, %p224_p3 }
  0x10   :  { %234 = shalt.err (!%p231_p7)
}
  0x11   :  { %s286_s22 = smov 128   ;;  %s287_s23 = smov 8  }
  0x12   :  { %22 = dma.hbm_to_vmem [thread:$0]  %s364_s0, 256, %s17_s13, [#allocation3], %s286_s22, %s286_s22, %s287_s23  }
  0x13   :  { %s288_s26 = smov [#allocation5]   ;;  %s235_s30 = scalar_lea.hbm %s365_s1, 512 }
  0x14   :  { %s28_s27 = sshll.u32 %s288_s26, 4  ;;  %p236_p8 = scmp.ne.s32.totalorder %s365_s1, %s235_s30  ;;  %s29_s27 = int_to_ptr.vmem [resolvable:$true] %s28_s27 }
  0x15   :  { %p239_p9 = scmp.lt.u32.totalorder %s235_s30, %s365_s1 }
  0x17   :  { %p241_p10 = pnand %p239_p9, %p236_p8 }
  0x19   :  { %244 = shalt.err (!%p241_p10)
}
  0x1a   :  { %s245_s8 = scalar_lea.vmem %s29_s27, 512  ;;  %p250_p12 = scmp.lt.s32.totalorder %s29_s27, %s29_s27 }
  0x1b   :  { %p246_p11 = scmp.ne.s32.totalorder %s29_s27, %s245_s8  ;;  %p251_p13 = scmp.lt.s32.totalorder %s245_s8, %s245_s8 }
  0x1d   :  { %p252_p0 = por %p251_p13, %p250_p12 }
  0x1f   :  { %p253_p1 = pnand %p252_p0, %p246_p11 }
  0x21   :  { %256 = shalt.err (!%p253_p1)
}
  0x22   :  { %34 = dma.hbm_to_vmem [thread:$0]  %s365_s1, 512, %s29_s27, [#allocation6], %s286_s22, %s286_s22, %s287_s23  }
  0x23   :  { %279 = dma.done.wait [#allocation3], 256  }
  0x24   :  { %280 = vsyncadd [#allocation3], 4294967040 }
  0x25   :  { %281 = dma.done.wait [#allocation6], 512  }
  0x26   :  { %282 = vsyncadd [#allocation6], 4294966784  ;;  %vm56_vm0 = vcmask 261120   ;;  %v45_v0 = vld [vmem:[#allocation5] sm:$0xff]  ;;  %v46_v1 = vld [vmem:[#allocation5 + $0x8] sm:$0xff]  ;;  %s289_s11 = smov [#allocation7]  }
  0x27   :  { %vm197_vm1 = vmpackc.low %vm56_vm0, %vm56_vm0  ;;  %v47_v2 = vld [vmem:[#allocation5 + $0x10] sm:$0xff]  ;;  %v196_v3 = vpack.c.bf16 %v46_v1, %v45_v0  ;;  %v48_v4 = vld [vmem:[#allocation5 + $0x18] sm:$0xff]  ;;  %s159_s12 = sshll.u32 %s289_s11, 4  ;;  %s160_s12 = int_to_ptr.vmem [resolvable:$true] %s159_s12 }
  0x28   :  { %v43_v5 = vld [vmem:[#allocation2] sm:$0xff]  ;;  %v202_v6 = vpack.c.bf16 %v48_v4, %v47_v2  ;;  %v44_v7 = vld [vmem:[#allocation2 + $0x8] sm:$0xff]  ;;  %s257_s13 = scalar_lea.vmem %s160_s12, 256  ;;  %p262_p3 = scmp.lt.s32.totalorder %s160_s12, %s160_s12 }
  0x29   :  { %193 = vmatprep.mubr.msk.f32.mxu0 %vm56_vm0, %v43_v5  ;;  %198 = vmatprep.subr.msk.bf16.mxu0 %vm197_vm1, %v196_v3  ;;  %v172_v8 = vld [vmem:[%s366_s2] ss:$0 sm:$0xff]  ;;  %p258_p2 = scmp.ne.s32.totalorder %s160_s12, %s257_s13  ;;  %p263_p4 = scmp.lt.s32.totalorder %s257_s13, %s257_s13 }
  0x2a   :  { %201 = vmatpush3.bf16.xpose.msk.msra.mxu0 %vm197_vm1, %v196_v3 }
  0x2b   :  { %204 = vmatprep.subr.msk.bf16.mxu0 %vm197_vm1, %v202_v6  ;;  %p264_p5 = por %p263_p4, %p262_p3 }
  0x2d   :  { %p265_p6 = pnand %p264_p5, %p258_p2 }
  0x32   :  { %207 = vmatpush3.bf16.xpose.msk.msra.mxu0 %vm197_vm1, %v202_v6 }
  0x39   :  { %194 = vmatmul.mubr.msk.f32.vlgmr.msra.gmra.mrb[0].mxu0 %vm56_vm0, %v44_v7 }
 0x10c   :  { %v195_v9 = vpop.f32.mrb[0].mxu0 }
 0x10d   :  { %v147_v10 = vadd.f32 %v195_v9, %v172_v8  ;;  %v141_v11 = vpop.f32.mrb[1].mxu0 }
 0x10e   :  { %v142_v12 = vadd.f32 %v172_v8, %v141_v11 }
 0x10f   :  { %v151_v13 = vmax.f32 %v147_v10, 0.0 }
 0x110   :  { %v150_v14 = vmax.f32 %v142_v12, 0.0 }
 0x111   :  { %153 = vst.msk [vmem:[#allocation7 + $0x8] sm:$0xff] %vm56_vm0, %v151_v13 }
 0x112   :  { %152 = vst.msk [vmem:[#allocation7] sm:$0xff] %vm56_vm0, %v150_v14 }
 0x113   :  { %268 = shalt.err (!%p265_p6)
}
 0x114   :  { %s269_s15 = scalar_lea.hbm %s367_s3, 256 }
 0x115   :  { %p270_p7 = scmp.ne.s32.totalorder %s367_s3, %s269_s15  ;;  %p273_p8 = scmp.lt.u32.totalorder %s269_s15, %s367_s3 }
 0x117   :  { %p275_p9 = pnand %p273_p8, %p270_p7 }
 0x119   :  { %278 = shalt.err (!%p275_p9)
}
 0x11a   :  { %165 = dma.vmem_to_hbm [thread:$0]  %s160_s12, 256, %s367_s3, [#allocation4], %s286_s22, %s286_s22, %s287_s23  }
 0x11b   :  { %283 = dma.done.wait [#allocation4], 256  }
 0x11c   :  { %284 = vsyncadd [#allocation4], 4294967040 }
 0x11d   :  { %169 = vsyncpa [#allocation3], 1 }
 0x11e   :  { %170 = vsyncpa [#allocation6], 1 }
 0x11f   :  { %171 = vsyncpa [#allocation4], 1 }

</bundles_post_ra>
